<compile_context>
chip_gen: v6e
topology: v6e:2x2x1
jax: 0.10.0
libtpu: 0.0.40
codegen_flags: <defaults>
</compile_context>

<pallas_src>
import functools

import jax
import jax.numpy as jnp
from jax.experimental import pallas as pl
from jax.experimental.pallas import tpu as pltpu

_MiB = 1024 * 1024


def _round_up(a, b):
    return -(-a // b) * b


def _lm_head_kernel(x_ref, gamma_ref, beta_ref, w_ref, b_ref, o_ref, y_ref, *, eps):
    # x_ref:     (tm, D)   input rows (resident across the vocab axis j)
    # gamma_ref: (1, D)    LayerNorm scale
    # beta_ref:  (1, D)    LayerNorm shift
    # w_ref:     (tv, D)   lm_head weight tile (PyTorch (V, D) layout)
    # b_ref:     (1, tv)   lm_head bias tile
    # o_ref:     (tm, tv)  logits tile
    # y_ref:     (tm, D)   VMEM scratch: LayerNorm output in the MXU input dtype

    # LayerNorm in f32, computed once per row block (first vocab tile only),
    # cached in VMEM; every vocab tile j reuses it.
    @pl.when(pl.program_id(1) == 0)
    def _():
        x = x_ref[...].astype(jnp.float32)
        mean = jnp.mean(x, axis=-1, keepdims=True)
        centered = x - mean
        var = jnp.mean(centered * centered, axis=-1, keepdims=True)
        xn = centered * jax.lax.rsqrt(var + eps)
        y = xn * gamma_ref[...].astype(jnp.float32) + beta_ref[...].astype(jnp.float32)
        y_ref[...] = y.astype(y_ref.dtype)

    # (tm, D) x (tv, D) contracting on D -> (tm, tv).  MXU inputs stay in the
    # matmul dtype (bf16 by default), f32 accumulate.  The transposed-RHS
    # contraction maps onto the MXU's weight-stationary path without an XLU
    # transpose of the weight tile.
    logits = jax.lax.dot_general(
        y_ref[...], w_ref[...],
        dimension_numbers=(((1,), (1,)), ((), ())),
        preferred_element_type=jnp.float32)
    logits = logits + b_ref[...].astype(jnp.float32)
    o_ref[...] = logits.astype(o_ref.dtype)


def _vmem_capacity_bytes():
    try:
        return int(pltpu.get_tpu_info().vmem_capacity_bytes)
    except Exception:
        return 64 * _MiB  # conservative fallback (v7x-sized)


def _resident_spec(block_shape, index_map):
    """BlockSpec for inputs that only change at i-block boundaries: single-buffer
    them (reclaims the tm*D double-buffer for bigger tiles)."""
    try:
        return pl.BlockSpec(block_shape, index_map, pipeline_mode=pl.Buffered(1))
    except Exception:
        return pl.BlockSpec(block_shape, index_map)


def _pick_tiles(M, V, D, *, x_bytes, w_bytes, b_bytes, out_bytes, y_bytes,
                budget_bytes, big_vmem):
    """Pick (tm, tv): largest tm first (cuts full-weight re-streams), then tv."""
    row_mult = 16 if y_bytes < 4 else 8          # bf16 packs 16 sublanes / vreg
    tm_cap = 2048 if big_vmem else 1024
    tm_cap = max(row_mult, min(tm_cap, _round_up(M, row_mult)))
    tv_cap = max(128, min(512, _round_up(V, 128)))   # lane-dense, >= MXU N

    tm_cands = sorted(range(row_mult, tm_cap + 1, row_mult), reverse=True)
    tv_cands = sorted(range(128, tv_cap + 1, 128), reverse=True)

    def need(tm, tv):
        return (tm * D * x_bytes               # x rows   (single-buffered, resident over j)
                + 2 * 2 * D * 4                # gamma / beta (f32 upper bound)
                + 2 * tv * D * w_bytes         # weight tile   (double-buffered)
                + 2 * tv * b_bytes             # bias tile     (double-buffered)
                + 2 * tm * tv * out_bytes      # logits tile   (double-buffered)
                + tm * D * y_bytes             # cached LN output scratch
                + 2 * _MiB)                    # Mosaic internal scratch fudge

    for tm in tm_cands:
        for tv in tv_cands:
            n = need(tm, tv)
            if n <= budget_bytes:
                return tm, tv, n
    tm, tv = tm_cands[-1], tv_cands[-1]
    return tm, tv, need(tm, tv)


def gpt_lm_head(x, ln_gamma, ln_beta, lm_w, lm_b, *, eps=1e-5, tm=None, tv=None,
                logits_dtype=None, mxu_dtype=None, vmem_budget_bytes=None):
    """GPTLMHead forward: logits = LayerNorm(x) @ lm_w.T + lm_b.

    x: (B, S, D); ln_gamma/ln_beta: (D,); lm_w: (V, D) PyTorch layout (kept
    as-is, never transposed in HBM); lm_b: (V,).

    mxu_dtype: dtype fed to the MXU.  Defaults to lm_w.dtype for sub-32-bit
    weights and to bf16 for f32 weights (never stream f32 weights).  The LN
    output is cast to this dtype before the matmul (small documented precision
    loss when x is f32); accumulation is always f32.
    logits_dtype defaults to x.dtype (keep bf16 logits bf16 to halve writeback).
    """
    B, S, D = x.shape
    V, Dw = lm_w.shape
    assert Dw == D, (Dw, D)
    M = B * S
    out_dtype = x.dtype if logits_dtype is None else logits_dtype

    if mxu_dtype is None:
        mxu_dtype = lm_w.dtype if jnp.dtype(lm_w.dtype).itemsize < 4 else jnp.bfloat16
    mxu_dtype = jnp.dtype(mxu_dtype)
    # One-time cast (no-op if already mxu_dtype).  Callers that own lm_w and
    # call repeatedly outside jit should cache the cast copy themselves.
    w = lm_w.astype(mxu_dtype)

    # Generation-aware VMEM sizing (128 MiB on v5e/v6e, 64 MiB on v7x).
    vmem_cap = _vmem_capacity_bytes()
    if vmem_budget_bytes is None:
        budget = int(vmem_cap * 0.72)
    else:
        budget = min(int(vmem_budget_bytes), vmem_cap - 8 * _MiB)

    x_itemsize = jnp.dtype(x.dtype).itemsize
    atm, atv, need = _pick_tiles(
        M, V, D,
        x_bytes=x_itemsize,
        w_bytes=mxu_dtype.itemsize,
        b_bytes=jnp.dtype(lm_b.dtype).itemsize,
        out_bytes=jnp.dtype(out_dtype).itemsize,
        y_bytes=mxu_dtype.itemsize,
        budget_bytes=budget,
        big_vmem=vmem_cap >= 96 * _MiB)
    tm = atm if tm is None else tm
    tv = atv if tv is None else tv

    # Compiler VMEM limit derived from actual tile need (+ headroom for Mosaic
    # internals and a possible x double-buffer fallback), clamped to physical.
    vmem_limit = int(min(vmem_cap,
                         max(need + tm * D * x_itemsize + 8 * _MiB, 32 * _MiB)))

    # Zero-pad ragged M = B*S and V (e.g. GPT-2's 50257); padded rows/cols are
    # sliced off below.  Padded rows LayerNorm to beta (finite), then discarded.
    M_pad = _round_up(M, tm)
    V_pad = _round_up(V, tv)

    x2 = x.reshape(M, D)
    if M_pad != M:
        x2 = jnp.pad(x2, ((0, M_pad - M), (0, 0)))
    b1 = lm_b
    if V_pad != V:
        w = jnp.pad(w, ((0, V_pad - V), (0, 0)))
        b1 = jnp.pad(b1, ((0, V_pad - V),))
    gamma2 = ln_gamma.reshape(1, D)
    beta2 = ln_beta.reshape(1, D)
    b2 = b1.reshape(1, V_pad)

    grid = (M_pad // tm, V_pad // tv)

    out = pl.pallas_call(
        functools.partial(_lm_head_kernel, eps=eps),
        out_shape=jax.ShapeDtypeStruct((M_pad, V_pad), out_dtype),
        grid_spec=pltpu.PrefetchScalarGridSpec(
            num_scalar_prefetch=0,
            grid=grid,
            in_specs=[
                _resident_spec((tm, D), lambda i, j: (i, 0)),   # x rows (resident over j)
                _resident_spec((1, D), lambda i, j: (0, 0)),    # gamma
                _resident_spec((1, D), lambda i, j: (0, 0)),    # beta
                pl.BlockSpec((tv, D), lambda i, j: (j, 0)),     # weight row tile, (V, D)
                pl.BlockSpec((1, tv), lambda i, j: (0, j)),     # bias tile
            ],
            out_specs=pl.BlockSpec((tm, tv), lambda i, j: (i, j)),
            scratch_shapes=[pltpu.VMEM((tm, D), mxu_dtype)],    # cached LN output
        ),
        compiler_params=pltpu.CompilerParams(
            # Rows shard across TensorCores (megacore); vocab is the sequential
            # inner axis so the LN scratch written at j == 0 is valid for all j.
            dimension_semantics=("parallel", "arbitrary"),
            vmem_limit_bytes=vmem_limit,
        ),
    )(x2, gamma2, beta2, w, b2)

    if M_pad != M or V_pad != V:
        out = out[:M, :V]
    return out.reshape(B, S, V)


def _reference(x, ln_gamma, ln_beta, lm_w, lm_b, eps=1e-5):
    xf = x.astype(jnp.float32)
    mean = jnp.mean(xf, axis=-1, keepdims=True)
    var = jnp.mean((xf - mean) ** 2, axis=-1, keepdims=True)
    xn = (xf - mean) * jax.lax.rsqrt(var + eps)
    y = xn * ln_gamma.astype(jnp.float32) + ln_beta.astype(jnp.float32)
    return y @ lm_w.astype(jnp.float32).T + lm_b.astype(jnp.float32)


if __name__ == "__main__":
    eps = 1e-5
    key = jax.random.PRNGKey(0)
    kx, kg, kb, kw, kbias = jax.random.split(key, 5)

    # Small config consistent with the module: batch=2, seq=8, n_embd=32, vocab=256.
    B, S, D, V = 2, 8, 32, 256
    x = jax.random.normal(kx, (B, S, D), dtype=jnp.float32)
    ln_gamma = jax.random.normal(kg, (D,), dtype=jnp.float32) * 0.1 + 1.0
    ln_beta = jax.random.normal(kb, (D,), dtype=jnp.float32) * 0.1
    lm_w = jax.random.normal(kw, (V, D), dtype=jnp.float32) * (1.0 / jnp.sqrt(D))
    lm_b = jax.random.normal(kbias, (V,), dtype=jnp.float32) * 0.1

    ref = _reference(x, ln_gamma, ln_beta, lm_w, lm_b, eps=eps)

    # 1) Default path: f32 weights are cast to bf16 for the MXU, f32 accumulate.
    out_def = gpt_lm_head(x, ln_gamma, ln_beta, lm_w, lm_b, eps=eps)
    out_def = jax.block_until_ready(out_def)
    assert out_def.shape == (B, S, V), out_def.shape
    assert jnp.allclose(out_def, ref, atol=7e-2, rtol=7e-2), "bf16-MXU mismatch vs reference"

    # 2) Explicit f32-MXU override (debug path).
    out_f32 = gpt_lm_head(x, ln_gamma, ln_beta, lm_w, lm_b, eps=eps,
                          mxu_dtype=jnp.float32)
    out_f32 = jax.block_until_ready(out_f32)
    assert out_f32.shape == (B, S, V), out_f32.shape
    assert jnp.allclose(out_f32, ref, atol=5e-2, rtol=5e-2), "f32 mismatch vs reference"

    # 3) bf16 inputs / bf16 weights / bf16 logits, with ragged M = 14 and
    #    V = 200 to exercise the padding path.
    Br, Sr, Vr = 2, 7, 200
    xr = jax.random.normal(kx, (Br, Sr, D), dtype=jnp.bfloat16)
    wr = (jax.random.normal(kw, (Vr, D), dtype=jnp.float32) / jnp.sqrt(D)).astype(jnp.bfloat16)
    br = jax.random.normal(kbias, (Vr,), dtype=jnp.float32) * 0.1
    out_bf = gpt_lm_head(xr, ln_gamma, ln_beta, wr, br, eps=eps)
    out_bf = jax.block_until_ready(out_bf)
    ref_bf = _reference(xr.astype(jnp.float32), ln_gamma, ln_beta,
                        wr.astype(jnp.float32), br, eps=eps)
    assert out_bf.shape == (Br, Sr, Vr), out_bf.shape
    assert out_bf.dtype == jnp.bfloat16, out_bf.dtype
    assert jnp.allclose(out_bf.astype(jnp.float32), ref_bf, atol=1.5e-1, rtol=5e-2), \
        "bf16 mismatch vs reference"

    print("KERNEL_OK")
</pallas_src>

<mosaic_0001>
module attributes {stable_mosaic.version = 11 : i64} {
  func.func @_lm_head_kernel(%arg0: i32, %arg1: i32, %arg2: memref<16x32xf32, #tpu.memory_space<vmem>>, %arg3: memref<1x32xf32, #tpu.memory_space<vmem>>, %arg4: memref<1x32xf32, #tpu.memory_space<vmem>>, %arg5: memref<256x32xbf16, #tpu.memory_space<vmem>>, %arg6: memref<1x256xf32, #tpu.memory_space<vmem>>, %arg7: memref<16x256xf32, #tpu.memory_space<vmem>>, %arg8: memref<16x32xbf16, #tpu.memory_space<vmem>>) attributes {dimension_semantics = [#tpu.dimension_semantics<parallel>, #tpu.dimension_semantics<arbitrary>], iteration_bounds = array<i64: 1, 1>, scalar_prefetch = 0 : i64, scratch_operands = 1 : i64, tpu.core_type = #tpu.core_type<tc>, window_params = [{pipeline_mode = #tpu.pipeline_mode<synchronous>, transform_indices = @transform_0, window_bounds = array<i64: 16, 32>}, {pipeline_mode = #tpu.pipeline_mode<synchronous>, transform_indices = @transform_1, window_bounds = array<i64: 1, 32>}, {pipeline_mode = #tpu.pipeline_mode<synchronous>, transform_indices = @transform_2, window_bounds = array<i64: 1, 32>}, {transform_indices = @transform_3, window_bounds = array<i64: 256, 32>}, {transform_indices = @transform_4, window_bounds = array<i64: 1, 256>}, {transform_indices = @transform_5, window_bounds = array<i64: 16, 256>}]} {
    %c0_i32 = arith.constant 0 : i32
    %0 = arith.cmpi eq, %arg1, %c0_i32 : i32
    %1 = arith.extui %0 : i1 to i32
    %c0_i32_0 = arith.constant 0 : i32
    %2 = arith.cmpi ne, %1, %c0_i32_0 : i32
    scf.if %2 {
      %c0_8 = arith.constant 0 : index
      %c0_9 = arith.constant 0 : index
      %10 = vector.load %arg2[%c0_8, %c0_9] : memref<16x32xf32, #tpu.memory_space<vmem>>, vector<16x32xf32>
      %cst_10 = arith.constant dense<0.000000e+00> : vector<16xf32>
      %11 = vector.multi_reduction <add>, %10, %cst_10 [1] : vector<16x32xf32> to vector<16xf32>
      %12 = vector.shape_cast %11 : vector<16xf32> to vector<16x1xf32>
      %cst_11 = arith.constant 3.200000e+01 : f32
      %13 = vector.broadcast %cst_11 : f32 to vector<16x1xf32>
      %14 = arith.divf %12, %13 : vector<16x1xf32>
      %15 = vector.broadcast %14 : vector<16x1xf32> to vector<16x32xf32>
      %16 = arith.subf %10, %15 : vector<16x32xf32>
      %17 = arith.mulf %16, %16 : vector<16x32xf32>
      %cst_12 = arith.constant dense<0.000000e+00> : vector<16xf32>
      %18 = vector.multi_reduction <add>, %17, %cst_12 [1] : vector<16x32xf32> to vector<16xf32>
      %19 = vector.shape_cast %18 : vector<16xf32> to vector<16x1xf32>
      %cst_13 = arith.constant 3.200000e+01 : f32
      %20 = vector.broadcast %cst_13 : f32 to vector<16x1xf32>
      %21 = arith.divf %19, %20 : vector<16x1xf32>
      %cst_14 = arith.constant 9.99999974E-6 : f32
      %22 = vector.broadcast %cst_14 : f32 to vector<16x1xf32>
      %23 = arith.addf %21, %22 : vector<16x1xf32>
      %24 = math.rsqrt %23 : vector<16x1xf32>
      %25 = vector.broadcast %24 : vector<16x1xf32> to vector<16x32xf32>
      %26 = arith.mulf %16, %25 : vector<16x32xf32>
      %c0_15 = arith.constant 0 : index
      %c0_16 = arith.constant 0 : index
      %27 = vector.load %arg3[%c0_15, %c0_16] : memref<1x32xf32, #tpu.memory_space<vmem>>, vector<1x32xf32>
      %28 = vector.broadcast %27 : vector<1x32xf32> to vector<16x32xf32>
      %29 = arith.mulf %26, %28 : vector<16x32xf32>
      %c0_17 = arith.constant 0 : index
      %c0_18 = arith.constant 0 : index
      %30 = vector.load %arg4[%c0_17, %c0_18] : memref<1x32xf32, #tpu.memory_space<vmem>>, vector<1x32xf32>
      %31 = vector.broadcast %30 : vector<1x32xf32> to vector<16x32xf32>
      %32 = arith.addf %29, %31 : vector<16x32xf32>
      %33 = arith.truncf %32 : vector<16x32xf32> to vector<16x32xbf16>
      %c0_19 = arith.constant 0 : index
      %c0_20 = arith.constant 0 : index
      %34 = vector.load %arg8[%c0_19, %c0_20] : memref<16x32xbf16, #tpu.memory_space<vmem>>, vector<16x32xbf16>
      tpu.vector_store %arg8[%c0_19, %c0_20], %33 {strides = array<i32>} : memref<16x32xbf16, #tpu.memory_space<vmem>>, vector<16x32xbf16>,
    } else {
    }
    %c0 = arith.constant 0 : index
    %c0_1 = arith.constant 0 : index
    %3 = vector.load %arg8[%c0, %c0_1] : memref<16x32xbf16, #tpu.memory_space<vmem>>, vector<16x32xbf16>
    %c0_2 = arith.constant 0 : index
    %c0_3 = arith.constant 0 : index
    %4 = vector.load %arg5[%c0_2, %c0_3] : memref<256x32xbf16, #tpu.memory_space<vmem>>, vector<256x32xbf16>
    %cst = arith.constant dense<0.000000e+00> : vector<16x256xf32>
    %5 = tpu.matmul %3, %4, %cst {dimension_numbers = #tpu.dot_dimension_numbers<[1], [1], [0], [0], [0, 0, 1, 0], [], []>} : vector<16x32xbf16>, vector<256x32xbf16>, vector<16x256xf32> -> vector<16x256xf32>
    %c0_4 = arith.constant 0 : index
    %c0_5 = arith.constant 0 : index
    %6 = vector.load %arg6[%c0_4, %c0_5] : memref<1x256xf32, #tpu.memory_space<vmem>>, vector<1x256xf32>
    %7 = vector.broadcast %6 : vector<1x256xf32> to vector<16x256xf32>
    %8 = arith.addf %5, %7 : vector<16x256xf32>
    %c0_6 = arith.constant 0 : index
    %c0_7 = arith.constant 0 : index
    %9 = vector.load %arg7[%c0_6, %c0_7] : memref<16x256xf32, #tpu.memory_space<vmem>>, vector<16x256xf32>
    tpu.vector_store %arg7[%c0_6, %c0_7], %8 {strides = array<i32>} : memref<16x256xf32, #tpu.memory_space<vmem>>, vector<16x256xf32>,
    return
  }
  func.func @transform_0(%arg0: i32, %arg1: i32) -> (i32, i32) {
    %c0_i32 = arith.constant 0 : i32
    %c0_i32_0 = arith.constant 0 : i32
    return %arg0, %c0_i32 : i32, i32
  }
  func.func @transform_1(%arg0: i32, %arg1: i32) -> (i32, i32) {
    %c0_i32 = arith.constant 0 : i32
    %c0_i32_0 = arith.constant 0 : i32
    %c0_i32_1 = arith.constant 0 : i32
    return %c0_i32, %c0_i32_0 : i32, i32
  }
  func.func @transform_2(%arg0: i32, %arg1: i32) -> (i32, i32) {
    %c0_i32 = arith.constant 0 : i32
    %c0_i32_0 = arith.constant 0 : i32
    %c0_i32_1 = arith.constant 0 : i32
    return %c0_i32, %c0_i32_0 : i32, i32
  }
  func.func @transform_3(%arg0: i32, %arg1: i32) -> (i32, i32) {
    %c0_i32 = arith.constant 0 : i32
    %c0_i32_0 = arith.constant 0 : i32
    return %arg1, %c0_i32 : i32, i32
  }
  func.func @transform_4(%arg0: i32, %arg1: i32) -> (i32, i32) {
    %c0_i32 = arith.constant 0 : i32
    %c0_i32_0 = arith.constant 0 : i32
    return %c0_i32, %arg1 : i32, i32
  }
  func.func @transform_5(%arg0: i32, %arg1: i32) -> (i32, i32) {
    %c0_i32 = arith.constant 0 : i32
    return %arg0, %arg1 : i32, i32
  }
}

</mosaic_0001>

<bundles_post_ra>
// kernel: tpu_custom_call.1
= control target key start
LH: loop header
LB: loop body
LE: loop exit
PB: predicated region body
PF: predicated region fallthrough
CT: control target
= control target key end

     0   :  { %vm28_vm0 = vcmask 261120   ;;  %s548_s0 = inlined_call_operand.vmem [shape: f32[16,32], index: 0, kind: input, shape index: {}]   ;;  %s549_s1 = inlined_call_operand.vmem [shape: f32[1,32], index: 1, kind: input, shape index: {}]   ;;  %s550_s2 = inlined_call_operand.vmem [shape: f32[1,32], index: 2, kind: input, shape index: {}]   ;;  %s551_s3 = inlined_call_operand.vmem [shape: bf16[256,32], index: 3, kind: input, shape index: {}]   ;;  %s552_s4 = inlined_call_operand.vmem [shape: f32[1,256], index: 4, kind: input, shape index: {}]   ;;  %s553_s5 = inlined_call_operand.hbm [shape: f32[16,256], index: 5, kind: output, shape index: {}]  }
   0x1   :  { %v26_v0 = vld [vmem:[%s548_s0] sm:$0xff]  ;;  %v27_v1 = vld [vmem:[%s548_s0 + $0x8] sm:$0xff] }
   0x2   :  { %v29_v2 = vsel %vm28_vm0, %v26_v0, 0.0  ;;  %v32_v3 = vsel %vm28_vm0, %v27_v1, 0.0 }
   0x3   :  { %30 = vadd.xlane.f32.xlu0 %v29_v2 }
   0x7   :  { %33 = vadd.xlane.f32.xlu0 %v32_v3 }
   0x8   :  { %10 = vsyncpa [#allocation4], 0  ;;  %v384_v4 = vld [vmem:[%s551_s3 + $0x78] sm:$0xff]   ;;  %v386_v6 = vld [vmem:[%s551_s3 + $0x70] sm:$0xff]   ;;  %vm82_vm1 = vcmask 257024   ;;  %v121_v57 = vlaneseq  ;;  %s427_s30 = smov [#allocation3]  }
   0x9   :  { %v385_v5 = vld [vmem:[%s551_s3 + $0x38] sm:$0xff]   ;;  %373 = vmatprep.subr.msk.bf16.mxu0 %vm28_vm0, %v384_v4  ;;  %v387_v8 = vld [vmem:[%s551_s3 + $0x30] sm:$0xff]   ;;  %v388_v10 = vld [vmem:[%s551_s3 + $0x68] sm:$0xff]   ;;  %s320_s6 = sshll.u32 %s427_s30, 4  ;;  %s321_s6 = int_to_ptr.vmem [resolvable:$true] %s320_s6 }
   0xa   :  { %v242_v7 = vsel %vm28_vm0, %v385_v5, 0  ;;  %v239_v9 = vsel %vm28_vm0, %v387_v8, 0  ;;  %v389_v11 = vld [vmem:[%s551_s3 + $0x28] sm:$0xff]   ;;  %v390_v23 = vld [vmem:[%s551_s3 + $0x60] sm:$0xff]   ;;  %v392_v26 = vld [vmem:[%s551_s3 + $0x58] sm:$0xff]   ;;  %v122_v58 = vshrl.u32 %v121_v57, 7  ;;  %p410_p1 = scmp.lt.s32.totalorder %s321_s6, %s321_s6 }
   0xb   :  { %356 = vmatpush3.bf16.xpose.msra.mxu0 %v242_v7  ;;  %v236_v12 = vsel %vm28_vm0, %v389_v11, 0  ;;  %v391_v24 = vld [vmem:[%s551_s3 + $0x20] sm:$0xff]   ;;  %v393_v27 = vld [vmem:[%s551_s3 + $0x18] sm:$0xff]   ;;  %v394_v29 = vld [vmem:[%s551_s3 + $0x50] sm:$0xff]   ;;  %s405_s7 = scalar_lea.vmem %s321_s6, 512 }
   0xc   :  { %374 = vmatprep.subr.msk.bf16.mxu0 %vm28_vm0, %v386_v6  ;;  %v233_v25 = vsel %vm28_vm0, %v391_v24, 0  ;;  %v230_v28 = vsel %vm28_vm0, %v393_v27, 0  ;;  %v395_v30 = vld [vmem:[%s551_s3 + $0x10] sm:$0xff]   ;;  %v396_v32 = vld [vmem:[%s551_s3 + $0x48] sm:$0xff]   ;;  %v398_v35 = vld [vmem:[%s551_s3 + $0x40] sm:$0xff]   ;;  %v123_v59 = vsub.s32 0, %v122_v58  ;;  %p406_p0 = scmp.ne.s32.totalorder %s321_s6, %s405_s7  ;;  %p411_p2 = scmp.lt.s32.totalorder %s405_s7, %s405_s7 }
   0xd   :  { %v227_v31 = vsel %vm28_vm0, %v395_v30, 0  ;;  %v397_v33 = vld [vmem:[%s551_s3 + $0x8] sm:$0xff]   ;;  %v399_v36 = vld [vmem:[%s551_s3] sm:$0xff]   ;;  %v127_v61 = vsub.s32 1, %v122_v58 }
   0xe   :  { %v224_v34 = vsel %vm28_vm0, %v397_v33, 0  ;;  %v221_v37 = vsel %vm28_vm0, %v399_v36, 0  ;;  %v331_v45 = vld [vmem:[%s549_s1] ss:$0 sm:$0xff]  ;;  %p412_p3 = por %p411_p2, %p410_p1 }
   0xf   :  { %v332_v47 = vld [vmem:[%s550_s2] ss:$0 sm:$0xff] }
  0x10   :  { %v119_v60 = vld [vmem:[%s552_s4] sm:$0x3]  ;;  %p413_p4 = pnand %p412_p3, %p406_p0 }
  0x11   :  { %v124_v62 = vrot.slane %v119_v60, %v123_v59  ;;  %v128_v63 = vrot.slane %v119_v60, %v127_v61 }
  0x13   :  { %358 = vmatpush3.bf16.xpose.msra.mxu0 %v239_v9 }
  0x14   :  { %375 = vmatprep.subr.msk.bf16.mxu0 %vm28_vm0, %v388_v10 }
  0x1b   :  { %360 = vmatpush3.bf16.xpose.msra.mxu0 %v236_v12 }
  0x1c   :  { %376 = vmatprep.subr.msk.bf16.mxu0 %vm28_vm0, %v390_v23 }
  0x23   :  { %362 = vmatpush3.bf16.xpose.msra.mxu0 %v233_v25 }
  0x24   :  { %377 = vmatprep.subr.msk.bf16.mxu0 %vm28_vm0, %v392_v26 }
  0x2b   :  { %364 = vmatpush3.bf16.xpose.msra.mxu0 %v230_v28 }
  0x2c   :  { %378 = vmatprep.subr.msk.bf16.mxu0 %vm28_vm0, %v394_v29 }
  0x33   :  { %366 = vmatpush3.bf16.xpose.msra.mxu0 %v227_v31 }
  0x34   :  { %379 = vmatprep.subr.msk.bf16.mxu0 %vm28_vm0, %v396_v32 }
  0x3b   :  { %368 = vmatpush3.bf16.xpose.msra.mxu0 %v224_v34 }
  0x3c   :  { %380 = vmatprep.subr.msk.bf16.mxu0 %vm28_vm0, %v398_v35 }
  0x43   :  { %370 = vmatpush3.bf16.xpose.msra.mxu0 %v221_v37 }
  0x8c   :  { %v31_v13 = vpop.xlane.xlu0 %30 }
  0x8d   :  { %v36_v14 = vmul.f32 0.03125, %v31_v13 }
  0x8f   :  { %v38_v15 = vsub.f32 %v26_v0, %v36_v14 }
  0x90   :  { %v34_v16 = vpop.xlane.xlu0 %33 }
  0x91   :  { %v37_v17 = vmul.f32 0.03125, %v34_v16  ;;  %v40_v18 = vmul.f32 %v38_v15, %v38_v15 }
  0x93   :  { %v39_v19 = vsub.f32 %v27_v1, %v37_v17  ;;  %v42_v20 = vsel %vm28_vm0, %v40_v18, 0.0 }
  0x94   :  { %43 = vadd.xlane.f32.xlu1 %v42_v20 }
  0x95   :  { %v41_v21 = vmul.f32 %v39_v19, %v39_v19 }
  0x97   :  { %v45_v22 = vsel %vm28_vm0, %v41_v21, 0.0 }
  0x98   :  { %46 = vadd.xlane.f32.xlu1 %v45_v22 }
 0x11d   :  { %v44_v38 = vpop.xlane.xlu1 %43 }
 0x11e   :  { %v48_v39 = vmul.f32 0.03125, %v44_v38 }
 0x120   :  { %v50_v40 = vadd.f32 1e-05, %v48_v39 }
 0x121   :  { %v47_v41 = vpop.xlane.xlu1 %46 }
 0x122   :  { %401 = vrsqrt.f32 %v50_v40  ;;  %v49_v42 = vmul.f32 0.03125, %v47_v41 }
 0x124   :  { %v51_v43 = vadd.f32 1e-05, %v49_v42 }
 0x126   :  { %403 = vrsqrt.f32 %v51_v43 }
 0x12f   :  { %v402_v44 = vpop.eup %401 }
 0x130   :  { %v54_v46 = vmul.f32 %v402_v44, %v38_v15 }
 0x132   :  { %v63_v48 = vmul.f32 %v331_v45, %v54_v46 }
 0x133   :  { %v404_v49 = vpop.eup %403 }
 0x134   :  { %v72_v50 = vadd.f32 %v332_v47, %v63_v48  ;;  %v55_v51 = vmul.f32 %v404_v49, %v39_v19 }
 0x136   :  { %v353_v52 = vpack.c.bf16 %v72_v50, %v72_v50  ;;  %v64_v53 = vmul.f32 %v331_v45, %v55_v51 }
 0x138   :  { %83 = vst.msk [vmem:[#allocation2] sm:$0xf] %vm82_vm1, %v353_v52  ;;  %v73_v54 = vadd.f32 %v332_v47, %v64_v53 }
 0x13a   :  { %v354_v55 = vpack.c.bf16 %v73_v54, %v73_v54 }
 0x13c   :  { %84 = vst.msk [vmem:[#allocation2 + $0x4] sm:$0xf] %vm82_vm1, %v354_v55 }
 0x143   :  { %v400_v56 = vld [vmem:[#allocation2] sm:$0xff]  }
 0x144   :  { %371 = vmatprep.mubr.msk.bf16.mxu0 %vm28_vm0, %v400_v56 }
 0x145   :  { %372 = vmatmul.mubr.msk.bf16.vlgmr.msra.gmra.mxu0 %vm28_vm0, %v400_v56 }
 0x205   :  { %v302_v0 = vpop.f32.mrf.mxu0 }
 0x206   :  { %v303_v1 = vadd.f32 %v302_v0, %v124_v62 }
 0x207   :  { %v304_v2 = vpop.f32.mrf.mxu0 }
 0x208   :  { %311 = vst [vmem:[#allocation3] sm:$0xff] %v303_v1  ;;  %v305_v3 = vadd.f32 %v304_v2, %v128_v63 }
 0x209   :  { %v306_v4 = vpop.f32.mrf.mxu0 }
 0x20a   :  { %312 = vst [vmem:[#allocation3 + $0x8] sm:$0xff] %v305_v3  ;;  %v307_v5 = vadd.f32 %v306_v4, %v124_v62 }
 0x20b   :  { %v308_v6 = vpop.f32.mrf.mxu0 }
 0x20c   :  { %313 = vst [vmem:[#allocation3 + $0x10] sm:$0xff] %v307_v5  ;;  %v309_v7 = vadd.f32 %v308_v6, %v128_v63 }
 0x20e   :  { %314 = vst [vmem:[#allocation3 + $0x18] sm:$0xff] %v309_v7 }
 0x20f   :  { %416 = shalt.err (!%p413_p4)
}
 0x210   :  { %s428_s4 = smov 256   ;;  %s429_s8 = smov 16  }
 0x211   :  { %326 = dma.vmem_to_hbm [thread:$0]  %s321_s6, 512, %s553_s5, [#allocation4], %s428_s4, %s428_s4, %s429_s8  }
 0x212   :  { %425 = dma.done.wait [#allocation4], 512  }
 0x213   :  { %426 = vsyncadd [#allocation4], 4294966784 }
 0x214   :  { %330 = vsyncpa [#allocation4], 1 }

</bundles_post_ra>
